<compile_context>
chip_gen: v7x
topology: tpu7x:2x2x1
jax: 0.10.0
libtpu: 0.0.40
codegen_flags: <defaults>
</compile_context>

<pallas_src>
import jax
import jax.numpy as jnp
from jax.experimental import pallas as pl
from jax.experimental.pallas import tpu as pltpu


def _time_encoder_kernel(tt_ref, wf_ref, b_ref, kml_ref, kms_ref, o_ref):
    # tt_ref : (tn, Kin)  time values; Kin == K for 3-D tt, Kin == 1 for 2-D tt
    # wf_ref : (Kin, K*E) expand+affine weights:
    #            Kin == K : row k holds w = [w_lin, w_per] in lane block k, 0 elsewhere
    #            Kin == 1 : single row = w tiled K times
    # b_ref  : (1, K*E)   bias  b = [b_lin, b_per] tiled K times
    # kml_ref: (1, K*E)   k_map with only the linear column (e == 0) kept
    # kms_ref: (1, K*E)   k_map with the linear column zeroed
    # o_ref  : (tn, K*E)  lane-dense output block
    tt = tt_ref[...]
    wf = wf_ref[...]
    kin = tt.shape[1]

    # pre[:, k*E + e] = tt[:, k] * w[e] + b[e]
    # Built as a rank-Kin sum of broadcast outer products against the
    # block-diagonal weight matrix (exact f32, pure VPU work).
    pre = b_ref[...] + tt[:, 0:1] * wf[0:1, :]
    for k in range(1, kin):
        pre = pre + tt[:, k:k + 1] * wf[k:k + 1, :]

    # Column 0 of each E-block is the plain linear head, the rest go through
    # sin (EUP); the split is encoded in the pre-masked k_map copies.
    out = jnp.sin(pre) * kms_ref[...] + pre * kml_ref[...]
    o_ref[...] = out.astype(o_ref.dtype)


def time_encoder(tt, non_pad_mask, params, *,
                 target_block_bytes=1 << 20, out_dtype=jnp.float32):
    """JAX/Pallas equivalent of Time_Encoder.forward.

    non_pad_mask is accepted for API parity with the PyTorch module but is not
    used (the PyTorch forward rearranges it and then discards it).
    Set out_dtype=jnp.bfloat16 to halve store traffic if the consumer allows;
    all math stays in f32 and only the final store is cast.
    """
    del non_pad_mask

    w_lin = params["w_lin"].reshape(-1).astype(jnp.float32)   # (1,)
    b_lin = params["b_lin"].reshape(-1).astype(jnp.float32)   # (1,)
    w_per = params["w_per"].reshape(-1).astype(jnp.float32)   # (E-1,)
    b_per = params["b_per"].reshape(-1).astype(jnp.float32)   # (E-1,)
    k_map = params["k_map"]                                   # (1, 1, K, E)

    E = 1 + w_per.shape[0]
    K = k_map.shape[2]
    KE = K * E
    assert k_map.shape[3] == E

    w = jnp.concatenate([w_lin, w_per])                       # (E,)
    b = jnp.concatenate([b_lin, b_per])                       # (E,)

    if tt.ndim == 2:
        # Single time value per (b, l): keep the input at (N, 1) and broadcast
        # across K inside the kernel (no K-fold HBM materialization).
        B, L = tt.shape
        kin = 1
        tt2 = tt.reshape(B * L, 1).astype(jnp.float32)
        wf = jnp.tile(w, K).reshape(1, KE)
    elif tt.ndim == 3:
        B, L, Kt = tt.shape
        assert Kt == K, "tt type axis must match num_types of k_map"
        kin = K
        tt2 = tt.reshape(B * L, K).astype(jnp.float32)
        # block-diagonal expansion weights: wf[k, k*E + e] = w[e]
        wf = (jnp.eye(K, dtype=jnp.float32)[:, :, None]
              * w[None, None, :]).reshape(K, KE)
    else:
        raise ValueError(f"tt must be rank 2 or 3, got rank {tt.ndim}")

    bf = jnp.tile(b, K).reshape(1, KE)

    km = k_map.reshape(K, E).astype(jnp.float32)
    lin_col = (jnp.arange(E) == 0).astype(jnp.float32)        # (E,)
    km_lin = (km * lin_col[None, :]).reshape(1, KE)
    km_sin = (km * (1.0 - lin_col)[None, :]).reshape(1, KE)

    N = B * L
    # Row tile: ~target_block_bytes of lane-dense f32 output per grid step
    # (multiple of 8 sublanes). Double-buffered in+out blocks plus in-kernel
    # temporaries stay well under the 32 MiB scoped-VMEM default on
    # v5e/v6e/v7x, so no vmem_limit_bytes override is needed.
    tn = (target_block_bytes // (KE * 4)) // 8 * 8
    tn = int(max(8, min(8192, tn)))
    tn = min(tn, pl.cdiv(N, 8) * 8)        # don't exceed (rounded-up) N
    n_pad = pl.cdiv(N, tn) * tn
    if n_pad != N:
        tt2 = jnp.pad(tt2, ((0, n_pad - N), (0, 0)))

    out = pl.pallas_call(
        _time_encoder_kernel,
        out_shape=jax.ShapeDtypeStruct((n_pad, KE), out_dtype),
        grid_spec=pl.GridSpec(
            grid=(n_pad // tn,),
            in_specs=[
                pl.BlockSpec((tn, kin), lambda i: (i, 0)),
                pl.BlockSpec((kin, KE), lambda i: (0, 0)),
                pl.BlockSpec((1, KE), lambda i: (0, 0)),
                pl.BlockSpec((1, KE), lambda i: (0, 0)),
                pl.BlockSpec((1, KE), lambda i: (0, 0)),
            ],
            out_specs=pl.BlockSpec((tn, KE), lambda i: (i, 0)),
        ),
        compiler_params=pltpu.CompilerParams(
            dimension_semantics=("parallel",)),
    )(tt2, wf, bf, km_lin, km_sin)

    return out[:N].reshape(B, L, K, E)


def time_encoder_reference(tt, params):
    """Plain-JAX reference mirroring the PyTorch forward exactly."""
    w_lin = params["w_lin"]
    b_lin = params["b_lin"]
    w_per = params["w_per"]
    b_per = params["b_per"]
    k_map = params["k_map"]
    if tt.ndim == 2:
        t = tt[:, :, None, None].astype(jnp.float32)          # (B, L, 1, 1)
    else:
        t = tt[..., None].astype(jnp.float32)                  # (B, L, K, 1)
    out1 = t * w_lin.reshape(1, 1, 1, 1) + b_lin.reshape(1, 1, 1, 1)
    out2 = jnp.sin(t * w_per.reshape(1, 1, 1, -1) + b_per.reshape(1, 1, 1, -1))
    out = jnp.concatenate([out1, out2], axis=-1)
    return out * k_map


if __name__ == "__main__":
    # Small deterministic problem: batch=2, seq=8, num_types=4, embed_time=32.
    B, L, K, E = 2, 8, 4, 32

    key = jax.random.PRNGKey(0)
    k1, k2, k3, k4, k5, k6, k7 = jax.random.split(key, 7)

    params = {
        # nn.Linear(1, E - 1)
        "w_per": jax.random.normal(k1, (E - 1,), jnp.float32) * 0.5,
        "b_per": jax.random.normal(k2, (E - 1,), jnp.float32) * 0.1,
        # nn.Linear(1, 1)
        "w_lin": jax.random.normal(k3, (1,), jnp.float32),
        "b_lin": jax.random.normal(k4, (1,), jnp.float32),
        # nn.Parameter(torch.ones(1, 1, K, E)) -- randomized here so the
        # k_map multiply is actually exercised by the check.
        "k_map": 1.0 + 0.1 * jax.random.normal(k7, (1, 1, K, E), jnp.float32),
    }

    # 3-D tt path: (B, L, K)
    tt = jax.random.uniform(k5, (B, L, K), jnp.float32) * 10.0
    non_pad_mask = (jax.random.uniform(k6, (B, L, K)) > 0.2).astype(jnp.float32)
    out = jax.block_until_ready(time_encoder(tt, non_pad_mask, params))
    ref = time_encoder_reference(tt, params)
    assert out.shape == (B, L, K, E), out.shape
    assert jnp.allclose(out, ref, atol=1e-5, rtol=1e-5), (
        float(jnp.max(jnp.abs(out - ref))))

    # 2-D tt path: (B, L) with an odd B*L to exercise pad-and-trim.
    B2, L2 = 3, 7
    tt2d = jax.random.uniform(jax.random.PRNGKey(1), (B2, L2), jnp.float32) * 10.0
    mask2d = jnp.ones((B2, L2, K), jnp.float32)
    out2 = jax.block_until_ready(time_encoder(tt2d, mask2d, params))
    ref2 = time_encoder_reference(tt2d, params)
    assert out2.shape == (B2, L2, K, E), out2.shape
    assert jnp.allclose(out2, ref2, atol=1e-5, rtol=1e-5), (
        float(jnp.max(jnp.abs(out2 - ref2))))

    print("KERNEL_OK")
</pallas_src>

<mosaic_0001>
module attributes {stable_mosaic.version = 11 : i64} {
  func.func @_time_encoder_kernel(%arg0: i32, %arg1: memref<16x4xf32, #tpu.memory_space<vmem>>, %arg2: memref<4x128xf32, #tpu.memory_space<vmem>>, %arg3: memref<1x128xf32, #tpu.memory_space<vmem>>, %arg4: memref<1x128xf32, #tpu.memory_space<vmem>>, %arg5: memref<1x128xf32, #tpu.memory_space<vmem>>, %arg6: memref<16x128xf32, #tpu.memory_space<vmem>>) attributes {dimension_semantics = [#tpu.dimension_semantics<parallel>], iteration_bounds = array<i64: 1>, scalar_prefetch = 0 : i64, scratch_operands = 0 : i64, tpu.core_type = #tpu.core_type<tc>, window_params = [{transform_indices = @transform_0, window_bounds = array<i64: 16, 4>}, {pipeline_mode = #tpu.pipeline_mode<synchronous>, transform_indices = @transform_1, window_bounds = array<i64: 4, 128>}, {pipeline_mode = #tpu.pipeline_mode<synchronous>, transform_indices = @transform_2, window_bounds = array<i64: 1, 128>}, {pipeline_mode = #tpu.pipeline_mode<synchronous>, transform_indices = @transform_3, window_bounds = array<i64: 1, 128>}, {pipeline_mode = #tpu.pipeline_mode<synchronous>, transform_indices = @transform_4, window_bounds = array<i64: 1, 128>}, {transform_indices = @transform_5, window_bounds = array<i64: 16, 128>}]} {
    %c0 = arith.constant 0 : index
    %c0_0 = arith.constant 0 : index
    %0 = vector.load %arg1[%c0, %c0_0] : memref<16x4xf32, #tpu.memory_space<vmem>>, vector<16x4xf32>
    %c0_1 = arith.constant 0 : index
    %c0_2 = arith.constant 0 : index
    %1 = vector.load %arg2[%c0_1, %c0_2] : memref<4x128xf32, #tpu.memory_space<vmem>>, vector<4x128xf32>
    %c0_3 = arith.constant 0 : index
    %c0_4 = arith.constant 0 : index
    %2 = vector.load %arg3[%c0_3, %c0_4] : memref<1x128xf32, #tpu.memory_space<vmem>>, vector<1x128xf32>
    %3 = vector.extract_strided_slice %0 {offsets = [0, 0], sizes = [16, 1], strides = [1, 1]} : vector<16x4xf32> to vector<16x1xf32>
    %4 = vector.extract_strided_slice %1 {offsets = [0, 0], sizes = [1, 128], strides = [1, 1]} : vector<4x128xf32> to vector<1x128xf32>
    %5 = vector.broadcast %3 : vector<16x1xf32> to vector<16x128xf32>
    %6 = vector.broadcast %4 : vector<1x128xf32> to vector<16x128xf32>
    %7 = arith.mulf %5, %6 : vector<16x128xf32>
    %8 = vector.broadcast %2 : vector<1x128xf32> to vector<16x128xf32>
    %9 = arith.addf %8, %7 : vector<16x128xf32>
    %10 = vector.extract_strided_slice %0 {offsets = [0, 1], sizes = [16, 1], strides = [1, 1]} : vector<16x4xf32> to vector<16x1xf32>
    %11 = vector.extract_strided_slice %1 {offsets = [1, 0], sizes = [1, 128], strides = [1, 1]} : vector<4x128xf32> to vector<1x128xf32>
    %12 = vector.broadcast %10 : vector<16x1xf32> to vector<16x128xf32>
    %13 = vector.broadcast %11 : vector<1x128xf32> to vector<16x128xf32>
    %14 = arith.mulf %12, %13 : vector<16x128xf32>
    %15 = arith.addf %9, %14 : vector<16x128xf32>
    %16 = vector.extract_strided_slice %0 {offsets = [0, 2], sizes = [16, 1], strides = [1, 1]} : vector<16x4xf32> to vector<16x1xf32>
    %17 = vector.extract_strided_slice %1 {offsets = [2, 0], sizes = [1, 128], strides = [1, 1]} : vector<4x128xf32> to vector<1x128xf32>
    %18 = vector.broadcast %16 : vector<16x1xf32> to vector<16x128xf32>
    %19 = vector.broadcast %17 : vector<1x128xf32> to vector<16x128xf32>
    %20 = arith.mulf %18, %19 : vector<16x128xf32>
    %21 = arith.addf %15, %20 : vector<16x128xf32>
    %22 = vector.extract_strided_slice %0 {offsets = [0, 3], sizes = [16, 1], strides = [1, 1]} : vector<16x4xf32> to vector<16x1xf32>
    %23 = vector.extract_strided_slice %1 {offsets = [3, 0], sizes = [1, 128], strides = [1, 1]} : vector<4x128xf32> to vector<1x128xf32>
    %24 = vector.broadcast %22 : vector<16x1xf32> to vector<16x128xf32>
    %25 = vector.broadcast %23 : vector<1x128xf32> to vector<16x128xf32>
    %26 = arith.mulf %24, %25 : vector<16x128xf32>
    %27 = arith.addf %21, %26 : vector<16x128xf32>
    %28 = math.sin %27 : vector<16x128xf32>
    %c0_5 = arith.constant 0 : index
    %c0_6 = arith.constant 0 : index
    %29 = vector.load %arg5[%c0_5, %c0_6] : memref<1x128xf32, #tpu.memory_space<vmem>>, vector<1x128xf32>
    %30 = vector.broadcast %29 : vector<1x128xf32> to vector<16x128xf32>
    %31 = arith.mulf %28, %30 : vector<16x128xf32>
    %c0_7 = arith.constant 0 : index
    %c0_8 = arith.constant 0 : index
    %32 = vector.load %arg4[%c0_7, %c0_8] : memref<1x128xf32, #tpu.memory_space<vmem>>, vector<1x128xf32>
    %33 = vector.broadcast %32 : vector<1x128xf32> to vector<16x128xf32>
    %34 = arith.mulf %27, %33 : vector<16x128xf32>
    %35 = arith.addf %31, %34 : vector<16x128xf32>
    %c0_9 = arith.constant 0 : index
    %c0_10 = arith.constant 0 : index
    %36 = vector.load %arg6[%c0_9, %c0_10] : memref<16x128xf32, #tpu.memory_space<vmem>>, vector<16x128xf32>
    tpu.vector_store %arg6[%c0_9, %c0_10], %35 {strides = array<i32>} : memref<16x128xf32, #tpu.memory_space<vmem>>, vector<16x128xf32>,
    return
  }
  func.func @transform_0(%arg0: i32) -> (i32, i32) {
    %c0_i32 = arith.constant 0 : i32
    %c0_i32_0 = arith.constant 0 : i32
    return %arg0, %c0_i32 : i32, i32
  }
  func.func @transform_1(%arg0: i32) -> (i32, i32) {
    %c0_i32 = arith.constant 0 : i32
    %c0_i32_0 = arith.constant 0 : i32
    %c0_i32_1 = arith.constant 0 : i32
    return %c0_i32, %c0_i32_0 : i32, i32
  }
  func.func @transform_2(%arg0: i32) -> (i32, i32) {
    %c0_i32 = arith.constant 0 : i32
    %c0_i32_0 = arith.constant 0 : i32
    %c0_i32_1 = arith.constant 0 : i32
    return %c0_i32, %c0_i32_0 : i32, i32
  }
  func.func @transform_3(%arg0: i32) -> (i32, i32) {
    %c0_i32 = arith.constant 0 : i32
    %c0_i32_0 = arith.constant 0 : i32
    %c0_i32_1 = arith.constant 0 : i32
    return %c0_i32, %c0_i32_0 : i32, i32
  }
  func.func @transform_4(%arg0: i32) -> (i32, i32) {
    %c0_i32 = arith.constant 0 : i32
    %c0_i32_0 = arith.constant 0 : i32
    %c0_i32_1 = arith.constant 0 : i32
    return %c0_i32, %c0_i32_0 : i32, i32
  }
  func.func @transform_5(%arg0: i32) -> (i32, i32) {
    %c0_i32 = arith.constant 0 : i32
    %c0_i32_0 = arith.constant 0 : i32
    return %arg0, %c0_i32 : i32, i32
  }
}

</mosaic_0001>

<bundles_post_ra>
// kernel: tpu_custom_call.1
= control target key start
LH: loop header
LB: loop body
LE: loop exit
PB: predicated region body
PF: predicated region fallthrough
CT: control target
= control target key end

     0   :  { %v413_v1 = vmov 1   ;;  %v414_v2 = vmov 0   ;;  %s550_s0 = inlined_call_operand.vmem [shape: f32[16,4], index: 0, kind: input, shape index: {}]   ;;  %s551_s1 = inlined_call_operand.vmem [shape: f32[4,128], index: 1, kind: input, shape index: {}]   ;;  %s552_s2 = inlined_call_operand.vmem [shape: f32[1,128], index: 2, kind: input, shape index: {}]   ;;  %s553_s3 = inlined_call_operand.vmem [shape: f32[1,128], index: 3, kind: input, shape index: {}]   ;;  %s554_s4 = inlined_call_operand.vmem [shape: f32[1,128], index: 4, kind: input, shape index: {}]   ;;  %s555_s5 = inlined_call_operand.hbm [shape: f32[16,128], index: 5, kind: output, shape index: {}]  }
   0x1   :  { %v21_v0 = vld [vmem:[%s550_s0] sm:$0xff]  ;;  %376 = vset.pattern.permute.xlu1 %v413_v1  ;;  %375 = vset.pattern.permute.xlu0 %v414_v2 }
   0x2   :  { %10 = vsyncpa [#allocation3], 0  ;;  %50 = vperm.xlu1 %376, %v21_v0   ;;  %27 = vperm.xlu0 %375, %v21_v0   ;;  %v22_v3 = vld [vmem:[%s550_s0 + $0x8] sm:$0xff]  ;;  %v415_v4 = vmov 2   ;;  %v416_v5 = vmov 3   ;;  %v35_v6 = vlaneseq }
   0x3   :  { %v23_v9 = vld [vmem:[%s551_s1] sm:$0xf]  ;;  %v417_v62 = vmov 683565275   ;;  %v418_v2 = vmov 2475754826  }
   0x4   :  { %v36_v7 = vshrl.u32 %v35_v6, 7  ;;  %v343_v19 = vld [vmem:[%s552_s2] ss:$0 sm:$0xff]  ;;  %v420_v6 = vmov 2102212464  }
   0x6   :  { %54 = vperm.xlu1 %376, %v22_v3   ;;  %32 = vperm.xlu0 %375, %v22_v3   ;;  %v37_v8 = vsub.s32 0, %v36_v7  ;;  %v59_v13 = vsub.s32 1, %v36_v7  ;;  %v75_v14 = vsub.s32 2, %v36_v7  ;;  %v91_v20 = vsub.s32 3, %v36_v7 }
   0x8   :  { %v38_v12 = vrot.slane %v23_v9, %v37_v8  ;;  %v60_v21 = vrot.slane %v23_v9, %v59_v13  ;;  %v76_v23 = vrot.slane %v23_v9, %v75_v14  ;;  %v92_v28 = vrot.slane %v23_v9, %v91_v20 }
   0x9   :  { %v421_v8 = vmov 920167782  }
   0xa   :  { %378 = vset.pattern.permute.xlu1 %v415_v4  ;;  %377 = vset.pattern.permute.xlu0 %v415_v4  ;;  %v419_v4 = vmov 2131351028  }
   0xb   :  { %70 = vperm.xlu1 %378, %v22_v3   ;;  %66 = vperm.xlu0 %377, %v21_v0  }
   0xf   :  { %379 = vset.pattern.permute.xlu1 %v416_v5  ;;  %380 = vset.pattern.permute.xlu0 %v416_v5 }
  0x10   :  { %82 = vperm.xlu1 %379, %v21_v0   ;;  %86 = vperm.xlu0 %380, %v22_v3  }
  0x81   :  { %v51_v10 = vpop.permute.xlu1 %50  ;;  %v28_v11 = vpop.permute.xlu0 %27 }
  0x82   :  { %v39_v17 = vmul.f32 %v38_v12, %v28_v11  ;;  %v61_v29 = vmul.f32 %v60_v21, %v51_v10 }
  0x84   :  { %v47_v24 = vadd.f32 %v343_v19, %v39_v17 }
  0x85   :  { %v55_v15 = vpop.permute.xlu1 %54  ;;  %v33_v16 = vpop.permute.xlu0 %32 }
  0x86   :  { %v40_v18 = vmul.f32 %v38_v12, %v33_v16  ;;  %v62_v25 = vmul.f32 %v60_v21, %v55_v15  ;;  %v63_v33 = vadd.f32 %v61_v29, %v47_v24  ;;  %v422_v15 = vmov 1326507024  }
  0x88   :  { %v48_v22 = vadd.f32 %v343_v19, %v40_v18 }
  0x8a   :  { %v71_v26 = vpop.permute.xlu1 %70  ;;  %v67_v27 = vpop.permute.xlu0 %66  ;;  %v64_v30 = vadd.f32 %v62_v25, %v48_v22 }
  0x8b   :  { %v78_v31 = vmul.f32 %v76_v23, %v71_v26  ;;  %v77_v32 = vmul.f32 %v76_v23, %v67_v27 }
  0x8d   :  { %v80_v36 = vadd.f32 %v78_v31, %v64_v30  ;;  %v79_v37 = vadd.f32 %v77_v32, %v63_v33 }
  0x8f   :  { %v83_v34 = vpop.permute.xlu1 %82  ;;  %v87_v35 = vpop.permute.xlu0 %86 }
  0x90   :  { %v93_v38 = vmul.f32 %v92_v28, %v83_v34  ;;  %v94_v39 = vmul.f32 %v92_v28, %v87_v35 }
  0x92   :  { %v468_v40 = vadd.f32 %v93_v38, %v79_v37  ;;  %v470_v41 = vadd.f32 %v94_v39, %v80_v36 }
  0x94   :  { %v97_v42 = vand.u32 2147483647, %v468_v40  ;;  %v100_v43 = vand.u32 2139095040, %v468_v40  ;;  %v204_v44 = vand.u32 2139095040, %v470_v41  ;;  %v201_v47 = vand.u32 2147483647, %v470_v41 }
  0x95   :  { %vm99_vm14 = vcmp.lt.s32.totalorder %v468_v40, 0 }
  0x96   :  { %v101_v45 = vshrl.u32 %v100_v43, 23  ;;  %v104_v46 = vand.u32 8388607, %v97_v42  ;;  %v205_v48 = vshrl.u32 %v204_v44, 23  ;;  %v480_v53 = vand.u32 8388607, %v201_v47 }
  0x97   :  { %vm98_vm15 = vcmp.le.f32.partialorder %v97_v42, 0.7853982 }
  0x98   :  { %v344_v49 = vadd.s32 4294967169, %v101_v45  ;;  %v348_v50 = vadd.s32 4294967169, %v205_v48  ;;  %v105_v52 = vor.u32 8388608, %v104_v46  ;;  %v209_v60 = vor.u32 8388608, %v480_v53 }
  0x9a   :  { %v107_v51 = vadd.s32 1, %v344_v49  ;;  %v211_v54 = vadd.s32 1, %v348_v50  ;;  %v482_v59 = vshll.u32 %v105_v52, 8 }
  0x9c   :  { %vm108_vm0 = vcmp.gt.s32.totalorder %v107_v51, 0  ;;  %vm212_vm1 = vcmp.gt.s32.totalorder %v211_v54, 0 }
  0x9d   :  { %v109_v55 = vsel %vm108_vm0, %v107_v51, 0  ;;  %v213_v58 = vsel %vm212_vm1, %v211_v54, 0  ;;  %v249_v54 = vshll.u32 %v209_v60, 8  ;;  %vm203_vm0 = vcmp.lt.s32.totalorder %v470_v41, 0 }
  0x9e   :  { %v110_v56 = vshrl.u32 %v109_v55, 5  ;;  %v111_v57 = vand.u32 31, %v109_v55  ;;  %v485_v0 = vshrl.u32 %v213_v58, 5  ;;  %v215_v1 = vand.u32 31, %v213_v58 }
  0x9f   :  { %vm202_vm1 = vcmp.le.f32.partialorder %v201_v47, 0.7853982  ;;  %v352_v47 = vld [vmem:[%s554_s4] ss:$0 sm:$0xff] }
  0xa0   :  { %v112_v61 = vsub.s32 32, %v111_v57  ;;  %v114_v63 = vshll.u32 %v417_v62, %v111_v57  ;;  %v117_v3 = vshll.u32 %v418_v2, %v111_v57  ;;  %v120_v5 = vshll.u32 %v419_v4, %v111_v57 }
  0xa1   :  { %v123_v7 = vshll.u32 %v420_v6, %v111_v57  ;;  %v126_v9 = vshll.u32 %v421_v8, %v111_v57  ;;  %vm129_vm2 = vcmp.lt.s32.totalorder %v110_v56, 1  ;;  %vm130_vm3 = vcmp.lt.s32.totalorder %v110_v56, 2 }
  0xa2   :  { %v115_v10 = vshrl.u32 %v418_v2, %v112_v61  ;;  %v118_v11 = vshrl.u32 %v419_v4, %v112_v61  ;;  %v121_v12 = vshrl.u32 %v420_v6, %v112_v61  ;;  %v113_v13 = vshrl.u32 %v417_v62, %v112_v61 }
  0xa3   :  { %v124_v14 = vshrl.u32 %v421_v8, %v112_v61  ;;  %v127_v16 = vshrl.u32 %v422_v15, %v112_v61  ;;  %v216_v20 = vsub.s32 32, %v215_v1  ;;  %vm131_vm4 = vcmp.lt.s32.totalorder %v110_v56, 3 }
  0xa4   :  { %v116_v17 = vor.u32 %v115_v10, %v114_v63  ;;  %v119_v18 = vor.u32 %v118_v11, %v117_v3  ;;  %v122_v19 = vor.u32 %v121_v12, %v120_v5  ;;  %vm132_vm5 = vcmp.lt.s32.totalorder %v110_v56, 4 }
  0xa5   :  { %v125_v21 = vor.u32 %v124_v14, %v123_v7  ;;  %v128_v22 = vor.u32 %v127_v16, %v126_v9  ;;  %v218_v30 = vshll.u32 %v417_v62, %v215_v1  ;;  %v219_v33 = vshrl.u32 %v418_v2, %v216_v20 }
  0xa6   :  { %v133_v23 = vsel %vm129_vm2, %v113_v13, %v116_v17  ;;  %v134_v24 = vsel %vm132_vm5, %v122_v19, 2102212464  ;;  %v137_v25 = vsel %vm129_vm2, %v116_v17, %v119_v18  ;;  %v141_v26 = vsel %vm129_vm2, %v119_v18, %v122_v19 }
  0xa7   :  { %v135_v27 = vsel %vm131_vm4, %v119_v18, %v134_v24  ;;  %v138_v28 = vsel %vm132_vm5, %v125_v21, 920167782  ;;  %v142_v29 = vsel %vm132_vm5, %v128_v22, 1326507024  ;;  %v221_v34 = vshll.u32 %v418_v2, %v215_v1 }
  0xa8   :  { %v139_v31 = vsel %vm131_vm4, %v122_v19, %v138_v28  ;;  %v143_v32 = vsel %vm131_vm4, %v125_v21, %v142_v29  ;;  %v136_v35 = vsel %vm130_vm3, %v133_v23, %v135_v27  ;;  %v222_v38 = vshrl.u32 %v419_v4, %v216_v20 }
  0xa9   :  { %v140_v36 = vsel %vm130_vm3, %v137_v25, %v139_v31  ;;  %v144_v37 = vsel %vm130_vm3, %v141_v26, %v143_v32  ;;  %v220_v46 = vor.u32 %v219_v33, %v218_v30  ;;  %v224_v49 = vshll.u32 %v419_v4, %v215_v1 }
  0xaa   :  { %v494_v39 = vmul.u32.u64.low %v482_v59, %v144_v37  ;;  %v495_v43 = vmul.u32.u64.high %v482_v59, %v144_v37, %v494_v39  ;;  %v498_v44 = vmul.u32.u64.low %v482_v59, %v140_v36  ;;  %v499_v45 = vmul.u32.u64.high %v482_v59, %v140_v36, %v498_v44 }
  0xab   :  { %v223_v48 = vor.u32 %v222_v38, %v221_v34  ;;  %v225_v50 = vshrl.u32 %v420_v6, %v216_v20  ;;  %v227_v51 = vshll.u32 %v420_v6, %v215_v1  ;;  %v228_v52 = vshrl.u32 %v421_v8, %v216_v20 }
  0xac   :  { %v231_v53 = vshrl.u32 %v422_v15, %v216_v20  ;;  %v152_v55 = vmul.u32 %v482_v59, %v136_v35  ;;  %v217_v56 = vshrl.u32 %v417_v62, %v216_v20  ;;  %v230_v58 = vshll.u32 %v421_v8, %v215_v1 }
  0xad   :  { %v226_v57 = vor.u32 %v225_v50, %v224_v49  ;;  %vm154_vm6 = vc.u32 %v495_v43, %v498_v44  ;;  %v155_v61 = vadd.s32 1, %v499_v45  ;;  %v229_v63 = vor.u32 %v228_v52, %v227_v51 }
  0xae   :  { %vm233_vm7 = vcmp.lt.s32.totalorder %v485_v0, 1  ;;  %v232_v2 = vor.u32 %v231_v53, %v230_v58  ;;  %vm235_vm8 = vcmp.lt.s32.totalorder %v485_v0, 3  ;;  %vm236_vm9 = vcmp.lt.s32.totalorder %v485_v0, 4 }
  0xaf   :  { %v241_v3 = vsel %vm233_vm7, %v220_v46, %v223_v48  ;;  %v156_v60 = vsel %vm154_vm6, %v155_v61, %v499_v45  ;;  %v238_v4 = vsel %vm236_vm9, %v226_v57, 2102212464  ;;  %v242_v59 = vsel %vm236_vm9, %v229_v63, 920167782 }
  0xb0   :  { %v245_v62 = vsel %vm233_vm7, %v223_v48, %v226_v57  ;;  %v157_v5 = vadd.s32 %v156_v60, %v152_v55  ;;  %vm234_vm10 = vcmp.lt.s32.totalorder %v485_v0, 2  ;;  %v243_v1 = vsel %vm235_vm8, %v226_v57, %v242_v59 }
  0xb1   :  { %v246_v6 = vsel %vm236_vm9, %v232_v2, 1326507024  ;;  %v237_v7 = vsel %vm233_vm7, %v217_v56, %v220_v46  ;;  %v239_v8 = vsel %vm235_vm8, %v223_v48, %v238_v4  ;;  %v244_v9 = vsel %vm234_vm10, %v241_v3, %v243_v1 }
  0xb2   :  { %v247_v10 = vsel %vm235_vm8, %v229_v63, %v246_v6  ;;  %v158_v11 = vadd.s32 536870912, %v157_v5  ;;  %v509_v13 = vmul.u32.u64.low %v249_v54, %v244_v9  ;;  %v510_v14 = vmul.u32.u64.high %v249_v54, %v244_v9, %v509_v13 }
  0xb3   :  { %v248_v12 = vsel %vm234_vm10, %v245_v62, %v247_v10  ;;  %v240_v18 = vsel %vm234_vm10, %v237_v7, %v239_v8  ;;  %v153_v34 = vadd.s32 %v498_v44, %v495_v43  ;;  %vm189_vm5 = vweird.f32 %v468_v40 }
  0xb4   :  { %v512_v15 = vmul.u32.u64.low %v249_v54, %v248_v12  ;;  %v513_v16 = vmul.u32.u64.high %v249_v54, %v248_v12, %v512_v15  ;;  %v159_v17 = vshrl.u32 %v158_v11, 30  ;;  %v259_v20 = vadd.s32 1, %v510_v14 }
  0xb5   :  { %v256_v0 = vmul.u32 %v249_v54, %v240_v18  ;;  %vm293_vm9 = vweird.f32 %v470_v41 }
  0xb6   :  { %v160_v19 = vshll.u32 %v159_v17, 30  ;;  %vm258_vm11 = vc.u32 %v513_v16, %v509_v13  ;;  %v257_v55 = vadd.s32 %v509_v13, %v513_v16  ;;  %v183_v44 = vsub.s32 4, %v159_v17 }
  0xb7   :  { %v260_v22 = vsel %vm258_vm11, %v259_v20, %v510_v14 }
  0xb8   :  { %v161_v21 = vsub.s32 %v157_v5, %v160_v19  ;;  %v261_v23 = vadd.s32 %v260_v22, %v256_v0  ;;  %v184_v59 = vsel %vm99_vm14, %v183_v44, %v159_v17  ;;  %v353_v22 = vld [vmem:[%s553_s3] ss:$0 sm:$0xff]  ;;  %s423_s3 = smov [#allocation2]  }
  0xb9   :  { %v186_v7 = vsel %vm98_vm15, 0, %v184_v59  ;;  %s332_s4 = sshll.u32 %s423_s3, 4  ;;  %s333_s4 = int_to_ptr.vmem [resolvable:$true] %s332_s4 }
  0xba   :  { %v163_v24 = vsub.s32 0, %v161_v21  ;;  %v262_v25 = vadd.s32 536870912, %v261_v23  ;;  %v190_v10 = vadd.s32 3, %v186_v7  ;;  %s389_s27 = scalar_lea.vmem %s333_s4, 256  ;;  %p394_p1 = scmp.lt.s32.totalorder %s333_s4, %s333_s4 }
  0xbb   :  { %p390_p0 = scmp.ne.s32.totalorder %s333_s4, %s389_s27  ;;  %p395_p2 = scmp.lt.s32.totalorder %s389_s27, %s389_s27 }
  0xbc   :  { %v345_v26 = vmin.u32 %v163_v24, %v161_v21  ;;  %v263_v27 = vshrl.u32 %v262_v25, 30  ;;  %v191_v14 = vand.u32 3, %v190_v10 }
  0xbd   :  { %p396_p3 = por %p395_p2, %p394_p1 }
  0xbe   :  { %v165_v28 = vclz %v345_v26  ;;  %v264_v29 = vshll.u32 %v263_v27, 30  ;;  %v287_v9 = vsub.s32 4, %v263_v27  ;;  %vm196_vm2 = vcmp.eq.s32.totalorder %v191_v14, 2 }
  0xbf   :  { %vm193_vm3 = vcmp.eq.s32.totalorder %v191_v14, 0  ;;  %vm192_vm4 = vcmp.lt.s32.totalorder %v191_v14, 2  ;;  %p397_p4 = pnand %p396_p3, %p390_p0 }
  0xc0   :  { %v346_v30 = vadd.s32 4294967294, %v165_v28  ;;  %v265_v31 = vsub.s32 %v261_v23, %v264_v29  ;;  %v288_v12 = vsel %vm203_vm0, %v287_v9, %v263_v27  ;;  %v321_v27 = vmul.f32 %v353_v22, %v468_v40 }
  0xc1   :  { %v290_v16 = vsel %vm202_vm1, 0, %v288_v12 }
  0xc2   :  { %vm347_vm12 = vcmp.lt.s32.totalorder %v346_v30, 0  ;;  %v267_v33 = vsub.s32 0, %v265_v31  ;;  %v294_v0 = vadd.s32 3, %v290_v16 }
  0xc3   :  { %v168_v32 = vsel %vm347_vm12, 0, %v346_v30 }
  0xc4   :  { %v169_v35 = vsub.s32 32, %v168_v32  ;;  %v173_v36 = vsub.s32 4294967266, %v168_v32  ;;  %v349_v37 = vmin.u32 %v267_v33, %v265_v31  ;;  %v170_v38 = vshll.u32 %v161_v21, %v168_v32 }
  0xc5   :  { %v295_v25 = vand.u32 3, %v294_v0 }
  0xc6   :  { %v171_v39 = vshrl.u32 %v153_v34, %v169_v35  ;;  %v174_v45 = vadd.s32 127, %v173_v36  ;;  %v269_v46 = vclz %v349_v37 }
  0xc7   :  { %vm300_vm6 = vcmp.eq.s32.totalorder %v295_v25, 2  ;;  %vm297_vm7 = vcmp.eq.s32.totalorder %v295_v25, 0  ;;  %vm296_vm8 = vcmp.lt.s32.totalorder %v295_v25, 2 }
  0xc8   :  { %v172_v48 = vor.u32 %v171_v39, %v170_v38  ;;  %v175_v49 = vshll.u32 %v174_v45, 23  ;;  %v350_v50 = vadd.s32 4294967294, %v269_v46 }
  0xca   :  { %v176_v51 = vor.u32 4788187, %v175_v49  ;;  %vm351_vm13 = vcmp.lt.s32.totalorder %v350_v50, 0  ;;  %v179_v53 = vcvt.s32.f32 %v172_v48 }
  0xcb   :  { %v272_v54 = vsel %vm351_vm13, 0, %v350_v50 }
  0xcc   :  { %v177_v52 = vand.u32 2147483647, %v176_v51  ;;  %v273_v56 = vsub.s32 32, %v272_v54  ;;  %v277_v57 = vsub.s32 4294967266, %v272_v54  ;;  %v274_v58 = vshll.u32 %v265_v31, %v272_v54 }
  0xce   :  { %v180_v43 = vmul.f32 %v179_v53, %v177_v52  ;;  %v275_v61 = vshrl.u32 %v257_v55, %v273_v56  ;;  %v278_v63 = vadd.s32 127, %v277_v57 }
  0xd0   :  { %v181_v2 = vxor.u32 2147483648, %v180_v43  ;;  %v276_v3 = vor.u32 %v275_v61, %v274_v58  ;;  %v279_v60 = vshll.u32 %v278_v63, 23 }
  0xd2   :  { %v182_v4 = vsel %vm99_vm14, %v181_v2, %v180_v43  ;;  %v280_v5 = vor.u32 4788187, %v279_v60  ;;  %v283_v6 = vcvt.s32.f32 %v276_v3 }
  0xd3   :  { %v185_v62 = vsel %vm98_vm15, %v468_v40, %v182_v4  ;;  %v322_v40 = vmul.f32 %v353_v22, %v470_v41 }
  0xd4   :  { %381 = vcosq.f32 %v185_v62  ;;  %v281_v1 = vand.u32 2147483647, %v280_v5 }
  0xd5   :  { %383 = vsinq.f32 %v185_v62 }
  0xd6   :  { %v284_v8 = vmul.f32 %v283_v6, %v281_v1 }
  0xd8   :  { %v285_v11 = vxor.u32 2147483648, %v284_v8 }
  0xda   :  { %v286_v42 = vsel %vm203_vm0, %v285_v11, %v284_v8 }
  0xdb   :  { %v289_v13 = vsel %vm202_vm1, %v470_v41, %v286_v42 }
  0xdc   :  { %385 = vcosq.f32 %v289_v13 }
  0xdd   :  { %387 = vsinq.f32 %v289_v13 }
  0xde   :  { %v382_v15 = vpop.eup %381 }
  0xdf   :  { %v384_v17 = vpop.eup %383  ;;  %v197_v18 = vxor.u32 2147483648, %v382_v15 }
  0xe0   :  { %v194_v19 = vxor.u32 2147483648, %v384_v17 }
  0xe1   :  { %v198_v20 = vsel %vm196_vm2, %v197_v18, %v384_v17 }
  0xe2   :  { %v195_v21 = vsel %vm193_vm3, %v382_v15, %v194_v19 }
  0xe3   :  { %v199_v23 = vsel %vm192_vm4, %v195_v21, %v198_v20 }
  0xe4   :  { %v200_v24 = vsel %vm189_vm5, nan, %v199_v23 }
  0xe5   :  { %v312_v26 = vmul.f32 %v352_v47, %v200_v24 }
  0xe6   :  { %v386_v28 = vpop.eup %385 }
  0xe7   :  { %v323_v29 = vadd.f32 %v321_v27, %v312_v26  ;;  %v388_v30 = vpop.eup %387  ;;  %v301_v31 = vxor.u32 2147483648, %v386_v28 }
  0xe8   :  { %v298_v32 = vxor.u32 2147483648, %v388_v30 }
  0xe9   :  { %325 = vst [vmem:[#allocation2] sm:$0xff] %v323_v29  ;;  %v302_v33 = vsel %vm300_vm6, %v301_v31, %v388_v30 }
  0xea   :  { %v299_v34 = vsel %vm297_vm7, %v386_v28, %v298_v32 }
  0xeb   :  { %v303_v35 = vsel %vm296_vm8, %v299_v34, %v302_v33 }
  0xec   :  { %v304_v36 = vsel %vm293_vm9, nan, %v303_v35 }
  0xed   :  { %v313_v37 = vmul.f32 %v352_v47, %v304_v36 }
  0xef   :  { %v324_v38 = vadd.f32 %v322_v40, %v313_v37 }
  0xf1   :  { %326 = vst [vmem:[#allocation2 + $0x8] sm:$0xff] %v324_v38 }
  0xf2   :  { %400 = shalt.err (!%p397_p4)
}
  0xf3   :  { %s401_s30 = scalar_lea.hbm %s555_s5, 256 }
  0xf4   :  { %p402_p5 = scmp.ne.s32.totalorder %s555_s5, %s401_s30  ;;  %p405_p6 = scmp.lt.u32.totalorder %s401_s30, %s555_s5 }
  0xf6   :  { %p407_p7 = pnand %p405_p6, %p402_p5 }
  0xf8   :  { %410 = shalt.err (!%p407_p7)
}
  0xf9   :  { %s424_s10 = smov 128   ;;  %s425_s11 = smov 8  }
  0xfa   :  { %338 = dma.vmem_to_hbm [thread:$0]  %s333_s4, 256, %s555_s5, [#allocation3], %s424_s10, %s424_s10, %s425_s11  }
  0xfb   :  { %411 = dma.done.wait [#allocation3], 256  }
  0xfc   :  { %412 = vsyncadd [#allocation3], 4294967040 }
  0xfd   :  { %342 = vsyncpa [#allocation3], 1 }

</bundles_post_ra>
